<compile_context>
chip_gen: v5e
topology: v5e:2x2
jax: 0.10.0
libtpu: 0.0.40
codegen_flags: <defaults>
</compile_context>

<pallas_src>
import functools
import math

import jax
import jax.numpy as jnp
from jax import lax
from jax.experimental import pallas as pl
from jax.experimental.pallas import tpu as pltpu

_LANES = 128
_WIDTHS = (8192, 4096, 2048, 1024, 512, 256, 128)
_TARGET_ELEMS_2STREAM = 1 << 20     # ~4 MiB f32 per buffer (x in, x_hat out)
_TARGET_ELEMS_MANY = 1 << 19        # ~2 MiB f32 per buffer (x, x_hat, idx)
_MIN_GRID_STEPS = 8                 # pipelining + v7x dual-TC sharding
_VMEM_LIMIT = 32 * 1024 * 1024      # safe on v5e/v6e/v7x; covers worst case


# ---------------------------------------------------------------------------
# In-kernel uniform noise: counter hash -> f32 in [-step/2, step/2)
# ---------------------------------------------------------------------------
def _uniform_noise(seed_scalar, block_shape, step):
    rows, cols = block_shape
    # Per-block base is pure scalar-unit work.
    base = (pl.program_id(0).astype(jnp.uint32) * jnp.uint32(rows * cols)
            + seed_scalar.astype(jnp.uint32) * jnp.uint32(0x9E3779B9))
    r = lax.broadcasted_iota(jnp.int32, block_shape, 0).astype(jnp.uint32)
    c = lax.broadcasted_iota(jnp.int32, block_shape, 1).astype(jnp.uint32)
    if cols & (cols - 1) == 0:          # widths chosen here are powers of two
        lin = (r << int(math.log2(cols))) | c
    else:                               # generic fallback
        lin = r * jnp.uint32(cols) + c
    z = base + lin
    # lowbias32-style mix: xor/shift/mul only (VPU friendly).
    z = z ^ (z >> 16)
    z = z * jnp.uint32(0x7FEB352D)
    z = z ^ (z >> 15)
    z = z * jnp.uint32(0x846CA68B)
    z = z ^ (z >> 16)
    frac = (z >> 8).astype(jnp.int32).astype(jnp.float32) * jnp.float32(1.0 / (1 << 24))
    return frac * jnp.float32(step) - jnp.float32(0.5 * step)


# ---------------------------------------------------------------------------
# Kernels
# ---------------------------------------------------------------------------
def _round_nooff_kernel(x_ref, out_ref, *, step, inv_step):
    # x_hat == indexes when offset is None: a single output stream.
    x = x_ref[...].astype(jnp.float32)
    q = jnp.round(x * inv_step) * step
    out_ref[...] = q.astype(out_ref.dtype)


def _round_off_kernel(x_ref, off_ref, xhat_ref, idx_ref, *, step, inv_step):
    off = off_ref[...].astype(jnp.float32)          # (br, 1) or (br, width)
    x = x_ref[...].astype(jnp.float32) - off        # lane-broadcast if (br, 1)
    q = jnp.round(x * inv_step) * step
    idx_ref[...] = q.astype(idx_ref.dtype)
    xhat_ref[...] = (q + off).astype(xhat_ref.dtype)


def _noisy_nooff_kernel(seed_ref, x_ref, out_ref, *, step):
    x = x_ref[...].astype(jnp.float32)
    x_hat = x + _uniform_noise(seed_ref[0], x_ref.shape, step)
    out_ref[...] = x_hat.astype(out_ref.dtype)


def _noisy_off_kernel(seed_ref, x_ref, off_ref, xhat_ref, idx_ref, *, step):
    off = off_ref[...].astype(jnp.float32)
    x = x_ref[...].astype(jnp.float32) - off
    x_hat = x + _uniform_noise(seed_ref[0], x_ref.shape, step)
    idx_ref[...] = x_hat.astype(idx_ref.dtype)
    xhat_ref[...] = (x_hat + off).astype(xhat_ref.dtype)


# ---------------------------------------------------------------------------
# Layout helpers
# ---------------------------------------------------------------------------
def _choose_width(n):
    for w in _WIDTHS:
        if n % w == 0:
            return w
    return None


def _sublane_multiple(dtype):
    return max(8, 32 // jnp.dtype(dtype).itemsize)   # 8 / 16 / 32


def _block_rows(rows, width, dtype, n_big_streams):
    sub = _sublane_multiple(dtype)
    itemsize = jnp.dtype(dtype).itemsize
    target = _TARGET_ELEMS_2STREAM if n_big_streams <= 2 else _TARGET_ELEMS_MANY
    br = max(sub, target // width)
    # Guarantee a multi-step grid for tensors above a few MiB: needed for
    # DMA/compute overlap and for v7x to shard ("parallel") across both TCs.
    if rows * width * itemsize > (4 << 20):
        br = min(br, max(sub, -(-rows // _MIN_GRID_STEPS)))
    if br >= rows:
        return rows                                   # single block
    br = max(sub, (br // sub) * sub)                  # sublane-aligned
    # Prefer a br that divides rows -> no masked partial last block.
    cand = br
    while cand >= sub and cand >= br // 2:
        if rows % cand == 0:
            return cand
        cand -= sub
    return br


def _offset_tail_split(x_shape, off_shape):
    """Number of leading x dims after which offset is constant (size 1)."""
    nd = len(x_shape)
    off = (1,) * (nd - len(off_shape)) + tuple(off_shape)
    split = nd
    while split > 0 and off[split - 1] == 1:
        split -= 1
    return split


# ---------------------------------------------------------------------------
# Wrapper
# ---------------------------------------------------------------------------
def uniform_quantization_forward(x, offset=None, noisy=False, step=1.0, seed=0):
    """Pallas implementation of UniformQuantization.forward.

    Returns (x_hat, indexes) with the same shape/dtype as x.
    """
    orig_shape = x.shape
    dtype = x.dtype
    n = x.size
    step = float(step)
    inv_step = 1.0 / step

    # ---- plan a lane-dense (rows, width) streaming layout -------------------
    pad = 0
    x2d = None
    off2d = None
    off_is_reduced = False
    width = None

    if offset is not None:
        offset = jnp.asarray(offset)

    # Preferred offset path: offset constant over trailing dims of x ->
    # per-row scalar offsets (tiny (rows, 1) stream instead of a full N stream).
    if offset is not None and offset.ndim <= x.ndim:
        split = _offset_tail_split(x.shape, offset.shape)
        tail = 1
        for d in x.shape[split:]:
            tail *= d
        w = _choose_width(tail)
        if w is not None:
            width = w
            rows = n // width
            reps = tail // width
            lead_target = x.shape[:split] + (1,) * (x.ndim - split)
            off_lead = jnp.broadcast_to(offset.astype(jnp.float32),
                                        lead_target).reshape(-1)
            off2d = jnp.repeat(off_lead, reps).reshape(rows, 1)
            off_is_reduced = True
            x2d = x.reshape(rows, width)

    if width is None:
        width = _choose_width(n)
        if width is None:
            # Rare fallback for sizes not divisible by 128: pad + slice.
            # TODO(synk): in-kernel masked edge handling would avoid this extra
            # pad/slice HBM traffic for non-128-divisible sizes.
            pad = (-n) % _LANES
            width = _LANES
            x2d = jnp.pad(x.reshape(-1), (0, pad)).reshape(-1, width)
            if offset is not None:
                off_full = jnp.broadcast_to(offset.astype(dtype), orig_shape)
                off2d = jnp.pad(off_full.reshape(-1), (0, pad)).reshape(-1, width)
        else:
            x2d = x.reshape(-1, width)                # free reshape, no copy
            if offset is not None:
                # Generic fallback: offset varies along the last dims.
                off2d = jnp.broadcast_to(offset.astype(dtype),
                                         orig_shape).reshape(-1, width)

    rows = x2d.shape[0]
    n_big = 2 if offset is None else (3 if off_is_reduced else 4)
    br = _block_rows(rows, width, dtype, n_big)
    grid = (pl.cdiv(rows, br),)
    blk = pl.BlockSpec((br, width), lambda i, *_: (i, 0))
    if off2d is not None:
        off_blk = pl.BlockSpec((br, off2d.shape[1]), lambda i, *_: (i, 0))
    params = pltpu.CompilerParams(dimension_semantics=("parallel",),
                                  vmem_limit_bytes=_VMEM_LIMIT)

    def _unflatten(a):
        a = a.reshape(-1)
        if pad:
            a = a[:n]
        return a.reshape(orig_shape)

    if offset is None:
        out_shape = jax.ShapeDtypeStruct((rows, width), dtype)
        if noisy:
            gs = pltpu.PrefetchScalarGridSpec(
                num_scalar_prefetch=1, grid=grid, in_specs=[blk], out_specs=blk)
            out2d = pl.pallas_call(
                functools.partial(_noisy_nooff_kernel, step=step),
                grid_spec=gs, out_shape=out_shape, compiler_params=params,
            )(jnp.asarray([seed], jnp.int32), x2d)
        else:
            gs = pltpu.PrefetchScalarGridSpec(
                num_scalar_prefetch=0, grid=grid, in_specs=[blk], out_specs=blk)
            out2d = pl.pallas_call(
                functools.partial(_round_nooff_kernel, step=step, inv_step=inv_step),
                grid_spec=gs, out_shape=out_shape, compiler_params=params,
            )(x2d)
        out = _unflatten(out2d)
        return out, out                      # x_hat == indexes when offset is None

    out_shapes = (jax.ShapeDtypeStruct((rows, width), dtype),
                  jax.ShapeDtypeStruct((rows, width), dtype))
    if noisy:
        gs = pltpu.PrefetchScalarGridSpec(
            num_scalar_prefetch=1, grid=grid,
            in_specs=[blk, off_blk], out_specs=(blk, blk))
        xhat2d, idx2d = pl.pallas_call(
            functools.partial(_noisy_off_kernel, step=step),
            grid_spec=gs, out_shape=out_shapes, compiler_params=params,
        )(jnp.asarray([seed], jnp.int32), x2d, off2d)
    else:
        gs = pltpu.PrefetchScalarGridSpec(
            num_scalar_prefetch=0, grid=grid,
            in_specs=[blk, off_blk], out_specs=(blk, blk))
        xhat2d, idx2d = pl.pallas_call(
            functools.partial(_round_off_kernel, step=step, inv_step=inv_step),
            grid_spec=gs, out_shape=out_shapes, compiler_params=params,
        )(x2d, off2d)

    return _unflatten(xhat2d), _unflatten(idx2d)


# ---------------------------------------------------------------------------
# Demo / self-check
# ---------------------------------------------------------------------------
if __name__ == "__main__":
    key = jax.random.PRNGKey(0)
    k1, k2, k3 = jax.random.split(key, 3)

    B, C, H, W = 2, 4, 16, 16            # NCHW, matches PyTorch conv convention
    step = 0.5
    x = jax.random.normal(k1, (B, C, H, W), dtype=jnp.float32) * 3.0
    offset = jax.random.normal(k2, (1, C, 1, 1), dtype=jnp.float32) * 0.25

    # --- deterministic path, no offset ---
    x_hat, idx = uniform_quantization_forward(x, offset=None, noisy=False, step=step)
    jax.block_until_ready((x_hat, idx))
    ref = jnp.round(x / step) * step
    assert jnp.allclose(x_hat, ref, atol=1e-6), "x_hat mismatch (no offset)"
    assert jnp.allclose(idx, ref, atol=1e-6), "indexes mismatch (no offset)"

    # --- deterministic path, with (reduced per-channel) offset ---
    x_hat_o, idx_o = uniform_quantization_forward(x, offset=offset, noisy=False, step=step)
    jax.block_until_ready((x_hat_o, idx_o))
    off_b = jnp.broadcast_to(offset, x.shape)
    ref_idx = jnp.round((x - off_b) / step) * step
    assert jnp.allclose(idx_o, ref_idx, atol=1e-6), "indexes mismatch (offset)"
    assert jnp.allclose(x_hat_o, ref_idx + off_b, atol=1e-6), "x_hat mismatch (offset)"

    # --- noisy path, with offset (distributional check only) ---
    x_hat_n, idx_n = uniform_quantization_forward(x, offset=offset, noisy=True,
                                                  step=step, seed=42)
    jax.block_until_ready((x_hat_n, idx_n))
    noise = idx_n - (x - off_b)
    assert bool(jnp.all(noise >= -step / 2 - 1e-5)), "noise below -step/2"
    assert bool(jnp.all(noise <= step / 2 + 1e-5)), "noise above step/2"
    assert jnp.allclose(x_hat_n, idx_n + off_b, atol=1e-6), "noisy x_hat mismatch"

    # --- noisy path, no offset ---
    x_hat_n2, idx_n2 = uniform_quantization_forward(x, offset=None, noisy=True,
                                                    step=step, seed=7)
    jax.block_until_ready((x_hat_n2, idx_n2))
    noise2 = idx_n2 - x
    assert bool(jnp.all(noise2 >= -step / 2 - 1e-5)), "noise below -step/2 (no offset)"
    assert bool(jnp.all(noise2 <= step / 2 + 1e-5)), "noise above step/2 (no offset)"
    assert jnp.allclose(x_hat_n2, idx_n2, atol=1e-6), "noisy x_hat != indexes (no offset)"

    # --- mid-size tensor: exercises the multi-step grid path ---
    xb = jax.random.normal(k3, (128, 128, 128), dtype=jnp.float32) * 2.0
    xb_hat, xb_idx = uniform_quantization_forward(xb, offset=None, noisy=False, step=1.0)
    jax.block_until_ready((xb_hat, xb_idx))
    assert jnp.allclose(xb_hat, jnp.round(xb), atol=1e-6), "x_hat mismatch (mid-size)"

    print("KERNEL_OK")
</pallas_src>

<mosaic_0001>
module attributes {stable_mosaic.version = 11 : i64} {
  func.func @_round_nooff_kernel(%arg0: i32, %arg1: memref<1x2048xf32, #tpu.memory_space<vmem>>, %arg2: memref<1x2048xf32, #tpu.memory_space<vmem>>) attributes {dimension_semantics = [#tpu.dimension_semantics<parallel>], iteration_bounds = array<i64: 1>, scalar_prefetch = 0 : i64, scratch_operands = 0 : i64, tpu.core_type = #tpu.core_type<tc>, window_params = [{transform_indices = @transform_0, window_bounds = array<i64: 1, 2048>}, {transform_indices = @transform_1, window_bounds = array<i64: 1, 2048>}]} {
    %c0 = arith.constant 0 : index
    %c0_0 = arith.constant 0 : index
    %0 = vector.load %arg1[%c0, %c0_0] : memref<1x2048xf32, #tpu.memory_space<vmem>>, vector<1x2048xf32>
    %cst = arith.constant 2.000000e+00 : f32
    %1 = vector.broadcast %cst : f32 to vector<1x2048xf32>
    %2 = arith.mulf %0, %1 : vector<1x2048xf32>
    %3 = math.roundeven %2 : vector<1x2048xf32>
    %cst_1 = arith.constant 5.000000e-01 : f32
    %4 = vector.broadcast %cst_1 : f32 to vector<1x2048xf32>
    %5 = arith.mulf %3, %4 : vector<1x2048xf32>
    %c0_2 = arith.constant 0 : index
    %c0_3 = arith.constant 0 : index
    %6 = vector.load %arg2[%c0_2, %c0_3] : memref<1x2048xf32, #tpu.memory_space<vmem>>, vector<1x2048xf32>
    tpu.vector_store %arg2[%c0_2, %c0_3], %5 {strides = array<i32>} : memref<1x2048xf32, #tpu.memory_space<vmem>>, vector<1x2048xf32>,
    return
  }
  func.func @transform_0(%arg0: i32) -> (i32, i32) {
    %c0_i32 = arith.constant 0 : i32
    %c0_i32_0 = arith.constant 0 : i32
    return %arg0, %c0_i32 : i32, i32
  }
  func.func @transform_1(%arg0: i32) -> (i32, i32) {
    %c0_i32 = arith.constant 0 : i32
    %c0_i32_0 = arith.constant 0 : i32
    return %arg0, %c0_i32 : i32, i32
  }
}

</mosaic_0001>

<bundles_post_ra>
// kernel: tpu_custom_call.1
= control target key start
LH: loop header
LB: loop body
LE: loop exit
PB: predicated region body
PF: predicated region fallthrough
CT: control target
= control target key end

     0   :  { %6 = vsyncpa [#allocation3], 0  ;;  %s138_s0 = inlined_call_operand.hbm [shape: f32[1,2048], index: 0, kind: input, shape index: {}]   ;;  %s139_s1 = inlined_call_operand.hbm [shape: f32[1,2048], index: 1, kind: output, shape index: {}]  }
   0x1   :  { %7 = vsyncpa [#allocation4], 0  ;;  %s13_s8 = sshll.u32 %s138_s0, 4  ;;  %s120_s9 = smov [#allocation2]   ;;  %s14_s8 = int_to_ptr.hbm [resolvable:$true] %s13_s8 }
   0x2   :  { %s15_s10 = sshll.u32 %s120_s9, 4  ;;  %s16_s10 = int_to_ptr.vmem [resolvable:$true] %s15_s10 }
   0x3   :  { %18 = dma.hbm_to_vmem [thread:$0]  %s14_s8, 256, %s16_s10, [#allocation3]  }
   0x4   :  { %116 = dma.done.wait [#allocation3], 256  }
   0x5   :  { %117 = vsyncadd [#allocation3], 4294967040  ;;  %v23_v0 = vld [vmem:[#allocation2] sm:$0xff]  ;;  %v24_v1 = vld [vmem:[#allocation2 + $0x8] sm:$0xff]  ;;  %s121_s0 = smov [#allocation5]   ;;  %s40_s14 = sshll.u32 %s139_s1, 4  ;;  %s41_s14 = int_to_ptr.hbm [resolvable:$true] %s40_s14 }
   0x6   :  { %v25_v2 = vmul.f32 2.0, %v23_v0  ;;  %v26_v3 = vmul.f32 2.0, %v24_v1  ;;  %s38_s11 = sshll.u32 %s121_s0, 4  ;;  %s39_s11 = int_to_ptr.vmem [resolvable:$true] %s38_s11 }
   0x8   :  { %v52_v4 = vcvt.f32.s32 %v25_v2  ;;  %v50_v5 = vand.u32 2147483647, %v25_v2  ;;  %v60_v6 = vcvt.f32.s32 %v26_v3  ;;  %v55_v8 = vand.u32 2147483648, %v25_v2 }
   0x9   :  { %v58_v9 = vand.u32 2147483647, %v26_v3  ;;  %v63_v11 = vand.u32 2147483648, %v26_v3 }
   0xa   :  { %v53_v7 = vcvt.s32.f32 %v52_v4  ;;  %v61_v10 = vcvt.s32.f32 %v60_v6  ;;  %vm51_vm0 = vcmp.lt.f32.partialorder %v50_v5, 8388608.0 }
   0xb   :  { %vm59_vm1 = vcmp.lt.f32.partialorder %v58_v9, 8388608.0 }
   0xc   :  { %v54_v12 = vand.u32 2147483647, %v53_v7  ;;  %v62_v13 = vand.u32 2147483647, %v61_v10 }
   0xe   :  { %v56_v14 = vor.u32 %v55_v8, %v54_v12  ;;  %v64_v15 = vor.u32 %v63_v11, %v62_v13 }
  0x10   :  { %v57_v16 = vsel %vm51_vm0, %v56_v14, %v25_v2  ;;  %v65_v18 = vsel %vm59_vm1, %v64_v15, %v26_v3 }
  0x11   :  { %v29_v17 = vmul.f32 0.5, %v57_v16  ;;  %v30_v19 = vmul.f32 0.5, %v65_v18 }
  0x13   :  { %31 = vst [vmem:[#allocation5] sm:$0xff] %v29_v17 }
  0x14   :  { %32 = vst [vmem:[#allocation5 + $0x8] sm:$0xff] %v30_v19 }
  0x15   :  { %43 = dma.vmem_to_hbm [thread:$0]  %s39_s11, 256, %s41_s14, [#allocation4]  }
  0x16   :  { %118 = dma.done.wait [#allocation4], 256  }
  0x17   :  { %119 = vsyncadd [#allocation4], 4294967040 }
  0x18   :  { %48 = vsyncpa [#allocation3], 1 }
  0x19   :  { %49 = vsyncpa [#allocation4], 1 }

</bundles_post_ra>
